<compile_context>
chip_gen: v5e
topology: v5e:2x2
jax: 0.10.0
libtpu: 0.0.40
codegen_flags: <defaults>
</compile_context>

<pallas_src>
import functools

import jax
import jax.numpy as jnp
from jax.experimental import pallas as pl
from jax.experimental.pallas import tpu as pltpu

EPS = 1e-9


# ----------------------------------------------------------------------------
# Fused Pallas kernel: one grid step == one loss direction.
# ----------------------------------------------------------------------------
def _fused_loss_kernel(se_ref, sq_ref, sd_ref, tq_ref, td_ref, idq_ref, idd_ref,
                       out_ref, *, real_b, real_cb, emb_denom, inv_temp,
                       threshold, compute_emb, compute_scores, compute_con,
                       compute_dist):
    f32 = jnp.float32
    zero = f32(0.0)
    NEG = f32(-1e30)          # large-negative mask value (never overflows f32)

    b_pad = sq_ref.shape[1]
    cb_pad = sd_ref.shape[1]

    emb_val = zero
    sc_val = zero
    con_val = zero
    dis_val = zero

    # ---- embeddings MSE (padded entries are 0 - 0 = 0) ---------------------
    if compute_emb:
        d = se_ref[0] - tq_ref[0]
        emb_val = jnp.sum(d * d) * f32(1.0 / emb_denom)

    need_student = compute_scores or compute_con or compute_dist
    need_teacher = compute_scores or compute_dist
    dot_dims = (((1,), (1,)), ((), ()))   # contract over hidden (lane) axis

    if need_student:
        ss = jax.lax.dot_general(sq_ref[0], sd_ref[0], dimension_numbers=dot_dims,
                                 preferred_element_type=jnp.float32)  # (B_pad, CB_pad)
    if need_teacher:
        ts = jax.lax.dot_general(tq_ref[0], td_ref[0], dimension_numbers=dot_dims,
                                 preferred_element_type=jnp.float32)

    # ---- scores MSE (padded rows/cols give exact-zero diffs) ----------------
    if compute_scores:
        diff = ss - ts
        sc_val = jnp.sum(diff * diff) * f32(1.0 / (real_b * real_cb))

    if compute_con or compute_dist:
        row_ok = jax.lax.broadcasted_iota(jnp.int32, (b_pad, 1), 0) < real_b
        col_ok = jax.lax.broadcasted_iota(jnp.int32, (b_pad, cb_pad), 1) < real_cb

        def soft_ce(scores, labels):
            # mean over real rows of  -sum_j labels_ij * log_softmax(scores)_ij
            m = jnp.max(scores, axis=-1, keepdims=True)
            lse = m + jnp.log(jnp.sum(jnp.exp(scores - m), axis=-1, keepdims=True))
            per_row = jnp.sum(labels * (lse - scores), axis=-1, keepdims=True)
            per_row = jnp.where(row_ok, per_row, zero)   # drop padded rows
            return jnp.sum(per_row) * f32(1.0 / real_b)

    # ---- hard-label contrastive CE (labels built in-kernel from ids) -------
    if compute_con:
        match = (idq_ref[0] == idd_ref[0]) & col_ok        # (B_pad, CB_pad) bool
        match_f = match.astype(f32)
        labels = match_f / jnp.sum(match_f, axis=-1, keepdims=True)
        c_scores = ss * f32(inv_temp) - jnp.where(match, f32(threshold), zero)
        c_scores = jnp.where(col_ok, c_scores, NEG)        # mask padded columns
        con_val = soft_ce(c_scores, labels)

    # ---- teacher-softmax distillation CE ------------------------------------
    if compute_dist:
        tsc = jnp.where(col_ok, ts, NEG)
        tm = jnp.max(tsc, axis=-1, keepdims=True)
        te = jnp.exp(tsc - tm)                             # exactly 0 at padded cols
        tlabels = te / jnp.sum(te, axis=-1, keepdims=True)
        d_scores = ss * f32(inv_temp) - jnp.where(tlabels > zero, f32(threshold), zero)
        d_scores = jnp.where(col_ok, d_scores, NEG)
        dis_val = soft_ce(d_scores, tlabels)

    # ---- lane-dense (8,128) output block: losses live in lanes 0..3 --------
    lane = jax.lax.broadcasted_iota(jnp.int32, (8, 128), 1)
    out_ref[0] = (jnp.where(lane == 0, emb_val, zero)
                  + jnp.where(lane == 1, sc_val, zero)
                  + jnp.where(lane == 2, con_val, zero)
                  + jnp.where(lane == 3, dis_val, zero))


# ----------------------------------------------------------------------------
# Wrapper: padding / stacking glue + static branch handling.
# ----------------------------------------------------------------------------
def _round_up(x, m):
    return ((x + m - 1) // m) * m


def _pad2d(x, rows, cols):
    x = x.astype(jnp.float32)
    return jnp.pad(x, ((0, rows - x.shape[0]), (0, cols - x.shape[1])))


def _pad_ids(x, n):
    x = x.astype(jnp.int32)
    return jnp.pad(x, (0, n - x.shape[0]))


def dr_contrastive_distillation_loss(embeddings, config):
    s = embeddings["student"]
    t = embeddings["teacher"]

    w_emb = float(config["embeddings_loss_weight"])
    w_sc = float(config["scores_loss_weight"])
    w_con = float(config["contrastive_loss_weight"])
    w_dis = float(config["contrastive_distillation_loss_weight"])
    temperature = float(config["temperature"])
    threshold = float(config["threshold"])

    compute_emb = w_emb >= EPS
    compute_scores = w_sc >= EPS
    compute_con = w_con >= EPS
    compute_dist = w_dis >= EPS

    zero = jnp.float32(0.0)
    if not (compute_emb or compute_scores or compute_con or compute_dist):
        return zero, zero, zero, zero

    B, Ds = s["query"].shape
    CB = s["cb_query"].shape[0]
    Dt = t["query"].shape[1]

    has_proj = s.get("query_proj", None) is not None
    se_q = s["query_proj"] if has_proj else s["query"]
    se_d = s["document_proj"] if has_proj else s["document"]
    De = se_q.shape[1]                    # hidden dim of the embeddings-MSE pair

    B_pad = _round_up(B, 8)
    CB_pad = _round_up(CB, 128)
    D_pad = _round_up(max(Ds, Dt, De), 128)

    # Stacked, zero-padded operands; leading axis = direction.
    #   dir 0: (query, cb_document) side      dir 1: (document, cb_query) side
    SE = jnp.stack([_pad2d(se_q, B_pad, D_pad), _pad2d(se_d, B_pad, D_pad)])
    SQ = jnp.stack([_pad2d(s["query"], B_pad, D_pad),
                    _pad2d(s["document"], B_pad, D_pad)])
    SD = jnp.stack([_pad2d(s["cb_document"], CB_pad, D_pad),
                    _pad2d(s["cb_query"], CB_pad, D_pad)])
    TQ = jnp.stack([_pad2d(t["query"], B_pad, D_pad),
                    _pad2d(t["document"], B_pad, D_pad)])
    TD = jnp.stack([_pad2d(t["cb_document"], CB_pad, D_pad),
                    _pad2d(t["cb_query"], CB_pad, D_pad)])
    IDQ = jnp.stack([_pad_ids(embeddings["qids"], B_pad),
                     _pad_ids(embeddings["docids"], B_pad)]).reshape(2, B_pad, 1)
    IDD = jnp.stack([_pad_ids(embeddings["cb_qids"], CB_pad),
                     _pad_ids(embeddings["cb_docids"], CB_pad)]).reshape(2, 1, CB_pad)

    kern = functools.partial(
        _fused_loss_kernel,
        real_b=B, real_cb=CB, emb_denom=B * De,
        inv_temp=1.0 / temperature, threshold=threshold,
        compute_emb=compute_emb, compute_scores=compute_scores,
        compute_con=compute_con, compute_dist=compute_dist)

    q_spec = pl.BlockSpec((1, B_pad, D_pad), lambda i: (i, 0, 0))
    d_spec = pl.BlockSpec((1, CB_pad, D_pad), lambda i: (i, 0, 0))
    idq_spec = pl.BlockSpec((1, B_pad, 1), lambda i: (i, 0, 0))
    idd_spec = pl.BlockSpec((1, 1, CB_pad), lambda i: (i, 0, 0))
    out_spec = pl.BlockSpec((1, 8, 128), lambda i: (i, 0, 0))

    # Scoped-VMEM budget sized from the real footprint (double-buffered blocks
    # + in-kernel (B,CB) f32 temporaries), clamped to the v7x physical ceiling.
    block_bytes = 4 * (3 * B_pad * D_pad + 2 * CB_pad * D_pad) \
        + 4 * (B_pad + CB_pad) + 4 * 8 * 128
    score_bytes = 4 * B_pad * CB_pad * 8
    vmem_limit = int(min(max(32 << 20, 4 * block_bytes + score_bytes + (4 << 20)),
                         64 << 20))

    out = pl.pallas_call(
        kern,
        grid=(2,),
        in_specs=[q_spec, q_spec, d_spec, q_spec, d_spec, idq_spec, idd_spec],
        out_specs=out_spec,
        out_shape=jax.ShapeDtypeStruct((2, 8, 128), jnp.float32),
        compiler_params=pltpu.CompilerParams(
            dimension_semantics=("parallel",),
            vmem_limit_bytes=vmem_limit),
    )(SE, SQ, SD, TQ, TD, IDQ, IDD)

    sums = jnp.sum(out[:, 0, :4], axis=0)   # per-loss sums over the 2 directions

    embeddings_loss = w_emb * sums[0] if compute_emb else zero
    scores_loss = w_sc * sums[1] if compute_scores else zero
    contrastive_loss = w_con * sums[2] if compute_con else zero
    distill_loss = w_dis * sums[3] if compute_dist else zero
    return embeddings_loss, scores_loss, contrastive_loss, distill_loss


# ----------------------------------------------------------------------------
# Plain-JAX reference (mirrors the PyTorch forward) for verification.
# ----------------------------------------------------------------------------
def _build_labels_ref(qids, cb_qids):
    mask = (qids[:, None] == cb_qids[None, :]).astype(jnp.float32)
    return mask / jnp.sum(mask, axis=-1, keepdims=True)


def _ref_soft_ce(scores, labels):
    logp = jax.nn.log_softmax(scores, axis=-1)
    return jnp.mean(-jnp.sum(labels * logp, axis=-1))


def _ref_contrastive(q, d, labels, temperature, threshold):
    scores = q @ d.T / temperature
    scores = scores - jnp.where(labels > 0, threshold, 0.0)
    return _ref_soft_ce(scores, labels)


def reference_loss(embeddings, config):
    s, t = embeddings["student"], embeddings["teacher"]
    temp, thr = config["temperature"], config["threshold"]
    mse = lambda a, b: jnp.mean((a - b) ** 2)

    if s.get("query_proj", None) is not None:
        emb_raw = mse(s["query_proj"], t["query"]) + mse(s["document_proj"], t["document"])
    else:
        emb_raw = mse(s["query"], t["query"]) + mse(s["document"], t["document"])
    emb = config["embeddings_loss_weight"] * emb_raw

    sc = config["scores_loss_weight"] * (
        mse(s["query"] @ s["cb_document"].T, t["query"] @ t["cb_document"].T)
        + mse(s["document"] @ s["cb_query"].T, t["document"] @ t["cb_query"].T))

    lq = _build_labels_ref(embeddings["qids"], embeddings["cb_qids"])
    ld = _build_labels_ref(embeddings["docids"], embeddings["cb_docids"])
    con = config["contrastive_loss_weight"] * (
        _ref_contrastive(s["query"], s["cb_document"], lq, temp, thr)
        + _ref_contrastive(s["document"], s["cb_query"], ld, temp, thr))

    lq_d = jax.nn.softmax(t["query"] @ t["cb_document"].T, axis=-1)
    ld_d = jax.nn.softmax(t["document"] @ t["cb_query"].T, axis=-1)
    dis = config["contrastive_distillation_loss_weight"] * (
        _ref_contrastive(s["query"], s["cb_document"], lq_d, temp, thr)
        + _ref_contrastive(s["document"], s["cb_query"], ld_d, temp, thr))

    return emb, sc, con, dis


# ----------------------------------------------------------------------------
# Main
# ----------------------------------------------------------------------------
if __name__ == "__main__":
    B, CB, D = 8, 16, 32  # queries per batch, cross-batch size, hidden dim

    config = {
        "temperature": 0.05,
        "threshold": 0.1,
        "embeddings_loss_weight": 1.0,
        "scores_loss_weight": 0.5,
        "contrastive_loss_weight": 1.0,
        "contrastive_distillation_loss_weight": 1.0,
    }

    key = jax.random.PRNGKey(0)
    ks = jax.random.split(key, 8)

    student = {
        "query": jax.random.normal(ks[0], (B, D), jnp.float32),
        "document": jax.random.normal(ks[1], (B, D), jnp.float32),
        "cb_query": jax.random.normal(ks[2], (CB, D), jnp.float32),
        "cb_document": jax.random.normal(ks[3], (CB, D), jnp.float32),
        "query_proj": None,      # None path: MSE directly against teacher
        "document_proj": None,
    }
    teacher = {
        "query": jax.random.normal(ks[4], (B, D), jnp.float32),
        "document": jax.random.normal(ks[5], (B, D), jnp.float32),
        "cb_query": jax.random.normal(ks[6], (CB, D), jnp.float32),
        "cb_document": jax.random.normal(ks[7], (CB, D), jnp.float32),
    }

    # ids: every in-batch id appears in the cross-batch ids (no zero-sum rows)
    qids = jnp.arange(B, dtype=jnp.int32) % 4
    cb_qids = jnp.arange(CB, dtype=jnp.int32) % 4
    docids = (jnp.arange(B, dtype=jnp.int32) + 1) % 4
    cb_docids = jnp.arange(CB, dtype=jnp.int32) % 4

    embeddings = {
        "qids": qids, "cb_qids": cb_qids,
        "docids": docids, "cb_docids": cb_docids,
        "student": student, "teacher": teacher,
    }

    out = dr_contrastive_distillation_loss(embeddings, config)
    out = jax.block_until_ready(out)

    ref = reference_loss(embeddings, config)
    for got, exp in zip(out, ref):
        assert jnp.allclose(got, exp, rtol=1e-3, atol=1e-4), (got, exp)

    print("KERNEL_OK")
</pallas_src>

<mosaic_0001>
module attributes {stable_mosaic.version = 11 : i64} {
  func.func @_fused_loss_kernel(%arg0: i32, %arg1: memref<1x8x128xf32, #tpu.memory_space<vmem>>, %arg2: memref<1x8x128xf32, #tpu.memory_space<vmem>>, %arg3: memref<1x128x128xf32, #tpu.memory_space<vmem>>, %arg4: memref<1x8x128xf32, #tpu.memory_space<vmem>>, %arg5: memref<1x128x128xf32, #tpu.memory_space<vmem>>, %arg6: memref<1x8x1xi32, #tpu.memory_space<vmem>>, %arg7: memref<1x1x128xi32, #tpu.memory_space<vmem>>, %arg8: memref<1x8x128xf32, #tpu.memory_space<vmem>>) attributes {dimension_semantics = [#tpu.dimension_semantics<parallel>], iteration_bounds = array<i64: 2>, scalar_prefetch = 0 : i64, scratch_operands = 0 : i64, tpu.core_type = #tpu.core_type<tc>, window_params = [{transform_indices = @transform_0, window_bounds = array<i64: 1, 8, 128>}, {transform_indices = @transform_1, window_bounds = array<i64: 1, 8, 128>}, {transform_indices = @transform_2, window_bounds = array<i64: 1, 128, 128>}, {transform_indices = @transform_3, window_bounds = array<i64: 1, 8, 128>}, {transform_indices = @transform_4, window_bounds = array<i64: 1, 128, 128>}, {transform_indices = @transform_5, window_bounds = array<i64: 1, 8, 1>}, {transform_indices = @transform_6, window_bounds = array<i64: 1, 1, 128>}, {transform_indices = @transform_7, window_bounds = array<i64: 1, 8, 128>}]} {
    %c0 = arith.constant 0 : index
    %c0_0 = arith.constant 0 : index
    %c0_1 = arith.constant 0 : index
    %0 = vector.load %arg1[%c0, %c0_0, %c0_1] : memref<1x8x128xf32, #tpu.memory_space<vmem>>, vector<1x8x128xf32>
    %1 = vector.shape_cast %0 : vector<1x8x128xf32> to vector<8x128xf32>
    %c0_2 = arith.constant 0 : index
    %c0_3 = arith.constant 0 : index
    %c0_4 = arith.constant 0 : index
    %2 = vector.load %arg4[%c0_2, %c0_3, %c0_4] : memref<1x8x128xf32, #tpu.memory_space<vmem>>, vector<1x8x128xf32>
    %3 = vector.shape_cast %2 : vector<1x8x128xf32> to vector<8x128xf32>
    %4 = arith.subf %1, %3 : vector<8x128xf32>
    %5 = arith.mulf %4, %4 : vector<8x128xf32>
    %6 = vector.shape_cast %5 : vector<8x128xf32> to vector<1x8x128xf32>
    %cst = arith.constant dense<0.000000e+00> : vector<1xf32>
    %7 = vector.multi_reduction <add>, %6, %cst [1, 2] : vector<1x8x128xf32> to vector<1xf32>
    %8 = vector.shape_cast %7 : vector<1xf32> to vector<1x1x1xf32>
    %9 = vector.extract %8[0, 0, 0] : f32 from vector<1x1x1xf32>
    %cst_5 = arith.constant 3.906250e-03 : f32
    %10 = arith.mulf %9, %cst_5 : f32
    %c0_6 = arith.constant 0 : index
    %c0_7 = arith.constant 0 : index
    %c0_8 = arith.constant 0 : index
    %11 = vector.load %arg2[%c0_6, %c0_7, %c0_8] : memref<1x8x128xf32, #tpu.memory_space<vmem>>, vector<1x8x128xf32>
    %12 = vector.shape_cast %11 : vector<1x8x128xf32> to vector<8x128xf32>
    %c0_9 = arith.constant 0 : index
    %c0_10 = arith.constant 0 : index
    %c0_11 = arith.constant 0 : index
    %13 = vector.load %arg3[%c0_9, %c0_10, %c0_11] : memref<1x128x128xf32, #tpu.memory_space<vmem>>, vector<1x128x128xf32>
    %14 = vector.shape_cast %13 : vector<1x128x128xf32> to vector<128x128xf32>
    %cst_12 = arith.constant dense<0.000000e+00> : vector<8x128xf32>
    %15 = tpu.matmul %12, %14, %cst_12 {dimension_numbers = #tpu.dot_dimension_numbers<[1], [1], [0], [0], [0, 0, 1, 0], [], []>} : vector<8x128xf32>, vector<128x128xf32>, vector<8x128xf32> -> vector<8x128xf32>
    %c0_13 = arith.constant 0 : index
    %c0_14 = arith.constant 0 : index
    %c0_15 = arith.constant 0 : index
    %16 = vector.load %arg4[%c0_13, %c0_14, %c0_15] : memref<1x8x128xf32, #tpu.memory_space<vmem>>, vector<1x8x128xf32>
    %17 = vector.shape_cast %16 : vector<1x8x128xf32> to vector<8x128xf32>
    %c0_16 = arith.constant 0 : index
    %c0_17 = arith.constant 0 : index
    %c0_18 = arith.constant 0 : index
    %18 = vector.load %arg5[%c0_16, %c0_17, %c0_18] : memref<1x128x128xf32, #tpu.memory_space<vmem>>, vector<1x128x128xf32>
    %19 = vector.shape_cast %18 : vector<1x128x128xf32> to vector<128x128xf32>
    %cst_19 = arith.constant dense<0.000000e+00> : vector<8x128xf32>
    %20 = tpu.matmul %17, %19, %cst_19 {dimension_numbers = #tpu.dot_dimension_numbers<[1], [1], [0], [0], [0, 0, 1, 0], [], []>} : vector<8x128xf32>, vector<128x128xf32>, vector<8x128xf32> -> vector<8x128xf32>
    %21 = arith.subf %15, %20 : vector<8x128xf32>
    %22 = arith.mulf %21, %21 : vector<8x128xf32>
    %23 = vector.shape_cast %22 : vector<8x128xf32> to vector<1x8x128xf32>
    %cst_20 = arith.constant dense<0.000000e+00> : vector<1xf32>
    %24 = vector.multi_reduction <add>, %23, %cst_20 [1, 2] : vector<1x8x128xf32> to vector<1xf32>
    %25 = vector.shape_cast %24 : vector<1xf32> to vector<1x1x1xf32>
    %26 = vector.extract %25[0, 0, 0] : f32 from vector<1x1x1xf32>
    %cst_21 = arith.constant 7.812500e-03 : f32
    %27 = arith.mulf %26, %cst_21 : f32
    %28 = tpu.iota {dimensions = array<i32: 0>} : vector<8x1xi32>
    %c8_i32 = arith.constant 8 : i32
    %29 = vector.broadcast %c8_i32 : i32 to vector<8x1xi32>
    %30 = arith.cmpi slt, %28, %29 : vector<8x1xi32>
    %31 = tpu.iota {dimensions = array<i32: 1>} : vector<8x128xi32>
    %c16_i32 = arith.constant 16 : i32
    %32 = vector.broadcast %c16_i32 : i32 to vector<8x128xi32>
    %33 = arith.cmpi slt, %31, %32 : vector<8x128xi32>
    %c0_22 = arith.constant 0 : index
    %c0_23 = arith.constant 0 : index
    %c0_24 = arith.constant 0 : index
    %34 = vector.load %arg6[%c0_22, %c0_23, %c0_24] : memref<1x8x1xi32, #tpu.memory_space<vmem>>, vector<1x8x1xi32>
    %35 = vector.shape_cast %34 : vector<1x8x1xi32> to vector<8x1xi32>
    %c0_25 = arith.constant 0 : index
    %c0_26 = arith.constant 0 : index
    %c0_27 = arith.constant 0 : index
    %36 = vector.load %arg7[%c0_25, %c0_26, %c0_27] : memref<1x1x128xi32, #tpu.memory_space<vmem>>, vector<1x1x128xi32>
    %37 = vector.shape_cast %36 : vector<1x1x128xi32> to vector<1x128xi32>
    %38 = vector.broadcast %35 : vector<8x1xi32> to vector<8x128xi32>
    %39 = vector.broadcast %37 : vector<1x128xi32> to vector<8x128xi32>
    %40 = arith.cmpi eq, %38, %39 : vector<8x128xi32>
    %41 = arith.andi %40, %33 : vector<8x128xi1>
    %42 = arith.extui %41 : vector<8x128xi1> to vector<8x128xi32>
    %43 = arith.sitofp %42 : vector<8x128xi32> to vector<8x128xf32>
    %cst_28 = arith.constant dense<0.000000e+00> : vector<8xf32>
    %44 = vector.multi_reduction <add>, %43, %cst_28 [1] : vector<8x128xf32> to vector<8xf32>
    %45 = vector.shape_cast %44 : vector<8xf32> to vector<8x1xf32>
    %46 = vector.broadcast %45 : vector<8x1xf32> to vector<8x128xf32>
    %47 = arith.divf %43, %46 : vector<8x128xf32>
    %cst_29 = arith.constant 2.000000e+01 : f32
    %48 = vector.broadcast %cst_29 : f32 to vector<8x128xf32>
    %49 = arith.mulf %15, %48 : vector<8x128xf32>
    %cst_30 = arith.constant 1.000000e-01 : f32
    %cst_31 = arith.constant 0.000000e+00 : f32
    %50 = vector.broadcast %cst_30 : f32 to vector<8x128xf32>
    %51 = vector.broadcast %cst_31 : f32 to vector<8x128xf32>
    %52 = arith.select %41, %50, %51 : vector<8x128xi1>, vector<8x128xf32>
    %53 = arith.subf %49, %52 : vector<8x128xf32>
    %cst_32 = arith.constant -1.000000e+30 : f32
    %54 = vector.broadcast %cst_32 : f32 to vector<8x128xf32>
    %55 = arith.select %33, %53, %54 : vector<8x128xi1>, vector<8x128xf32>
    %cst_33 = arith.constant dense<0xFF800000> : vector<8xf32>
    %56 = vector.multi_reduction <maximumf>, %55, %cst_33 [1] : vector<8x128xf32> to vector<8xf32>
    %57 = vector.shape_cast %56 : vector<8xf32> to vector<8x1xf32>
    %58 = vector.broadcast %57 : vector<8x1xf32> to vector<8x128xf32>
    %59 = arith.subf %55, %58 : vector<8x128xf32>
    %60 = math.exp %59 : vector<8x128xf32>
    %cst_34 = arith.constant dense<0.000000e+00> : vector<8xf32>
    %61 = vector.multi_reduction <add>, %60, %cst_34 [1] : vector<8x128xf32> to vector<8xf32>
    %62 = vector.shape_cast %61 : vector<8xf32> to vector<8x1xf32>
    %63 = math.log %62 : vector<8x1xf32>
    %64 = arith.addf %57, %63 : vector<8x1xf32>
    %65 = vector.broadcast %64 : vector<8x1xf32> to vector<8x128xf32>
    %66 = arith.subf %65, %55 : vector<8x128xf32>
    %67 = arith.mulf %47, %66 : vector<8x128xf32>
    %cst_35 = arith.constant dense<0.000000e+00> : vector<8xf32>
    %68 = vector.multi_reduction <add>, %67, %cst_35 [1] : vector<8x128xf32> to vector<8xf32>
    %69 = vector.shape_cast %68 : vector<8xf32> to vector<8x1xf32>
    %cst_36 = arith.constant 0.000000e+00 : f32
    %70 = vector.broadcast %cst_36 : f32 to vector<8x1xf32>
    %71 = arith.select %30, %69, %70 : vector<8x1xi1>, vector<8x1xf32>
    %72 = vector.shape_cast %71 : vector<8x1xf32> to vector<1x8x1xf32>
    %cst_37 = arith.constant dense<0.000000e+00> : vector<1xf32>
    %73 = vector.multi_reduction <add>, %72, %cst_37 [1, 2] : vector<1x8x1xf32> to vector<1xf32>
    %74 = vector.shape_cast %73 : vector<1xf32> to vector<1x1x1xf32>
    %75 = vector.extract %74[0, 0, 0] : f32 from vector<1x1x1xf32>
    %cst_38 = arith.constant 1.250000e-01 : f32
    %76 = arith.mulf %75, %cst_38 : f32
    %cst_39 = arith.constant -1.000000e+30 : f32
    %77 = vector.broadcast %cst_39 : f32 to vector<8x128xf32>
    %78 = arith.select %33, %20, %77 : vector<8x128xi1>, vector<8x128xf32>
    %cst_40 = arith.constant dense<0xFF800000> : vector<8xf32>
    %79 = vector.multi_reduction <maximumf>, %78, %cst_40 [1] : vector<8x128xf32> to vector<8xf32>
    %80 = vector.shape_cast %79 : vector<8xf32> to vector<8x1xf32>
    %81 = vector.broadcast %80 : vector<8x1xf32> to vector<8x128xf32>
    %82 = arith.subf %78, %81 : vector<8x128xf32>
    %83 = math.exp %82 : vector<8x128xf32>
    %cst_41 = arith.constant dense<0.000000e+00> : vector<8xf32>
    %84 = vector.multi_reduction <add>, %83, %cst_41 [1] : vector<8x128xf32> to vector<8xf32>
    %85 = vector.shape_cast %84 : vector<8xf32> to vector<8x1xf32>
    %86 = vector.broadcast %85 : vector<8x1xf32> to vector<8x128xf32>
    %87 = arith.divf %83, %86 : vector<8x128xf32>
    %cst_42 = arith.constant 2.000000e+01 : f32
    %88 = vector.broadcast %cst_42 : f32 to vector<8x128xf32>
    %89 = arith.mulf %15, %88 : vector<8x128xf32>
    %cst_43 = arith.constant 0.000000e+00 : f32
    %90 = vector.broadcast %cst_43 : f32 to vector<8x128xf32>
    %91 = arith.cmpf ogt, %87, %90 : vector<8x128xf32>
    %cst_44 = arith.constant 1.000000e-01 : f32
    %cst_45 = arith.constant 0.000000e+00 : f32
    %92 = vector.broadcast %cst_44 : f32 to vector<8x128xf32>
    %93 = vector.broadcast %cst_45 : f32 to vector<8x128xf32>
    %94 = arith.select %91, %92, %93 : vector<8x128xi1>, vector<8x128xf32>
    %95 = arith.subf %89, %94 : vector<8x128xf32>
    %cst_46 = arith.constant -1.000000e+30 : f32
    %96 = vector.broadcast %cst_46 : f32 to vector<8x128xf32>
    %97 = arith.select %33, %95, %96 : vector<8x128xi1>, vector<8x128xf32>
    %cst_47 = arith.constant dense<0xFF800000> : vector<8xf32>
    %98 = vector.multi_reduction <maximumf>, %97, %cst_47 [1] : vector<8x128xf32> to vector<8xf32>
    %99 = vector.shape_cast %98 : vector<8xf32> to vector<8x1xf32>
    %100 = vector.broadcast %99 : vector<8x1xf32> to vector<8x128xf32>
    %101 = arith.subf %97, %100 : vector<8x128xf32>
    %102 = math.exp %101 : vector<8x128xf32>
    %cst_48 = arith.constant dense<0.000000e+00> : vector<8xf32>
    %103 = vector.multi_reduction <add>, %102, %cst_48 [1] : vector<8x128xf32> to vector<8xf32>
    %104 = vector.shape_cast %103 : vector<8xf32> to vector<8x1xf32>
    %105 = math.log %104 : vector<8x1xf32>
    %106 = arith.addf %99, %105 : vector<8x1xf32>
    %107 = vector.broadcast %106 : vector<8x1xf32> to vector<8x128xf32>
    %108 = arith.subf %107, %97 : vector<8x128xf32>
    %109 = arith.mulf %87, %108 : vector<8x128xf32>
    %cst_49 = arith.constant dense<0.000000e+00> : vector<8xf32>
    %110 = vector.multi_reduction <add>, %109, %cst_49 [1] : vector<8x128xf32> to vector<8xf32>
    %111 = vector.shape_cast %110 : vector<8xf32> to vector<8x1xf32>
    %cst_50 = arith.constant 0.000000e+00 : f32
    %112 = vector.broadcast %cst_50 : f32 to vector<8x1xf32>
    %113 = arith.select %30, %111, %112 : vector<8x1xi1>, vector<8x1xf32>
    %114 = vector.shape_cast %113 : vector<8x1xf32> to vector<1x8x1xf32>
    %cst_51 = arith.constant dense<0.000000e+00> : vector<1xf32>
    %115 = vector.multi_reduction <add>, %114, %cst_51 [1, 2] : vector<1x8x1xf32> to vector<1xf32>
    %116 = vector.shape_cast %115 : vector<1xf32> to vector<1x1x1xf32>
    %117 = vector.extract %116[0, 0, 0] : f32 from vector<1x1x1xf32>
    %cst_52 = arith.constant 1.250000e-01 : f32
    %118 = arith.mulf %117, %cst_52 : f32
    %119 = tpu.iota {dimensions = array<i32: 1>} : vector<8x128xi32>
    %c0_i32 = arith.constant 0 : i32
    %120 = vector.broadcast %c0_i32 : i32 to vector<8x128xi32>
    %121 = arith.cmpi eq, %119, %120 : vector<8x128xi32>
    %cst_53 = arith.constant 0.000000e+00 : f32
    %122 = vector.broadcast %10 : f32 to vector<8x128xf32>
    %123 = vector.broadcast %cst_53 : f32 to vector<8x128xf32>
    %124 = arith.select %121, %122, %123 : vector<8x128xi1>, vector<8x128xf32>
    %c1_i32 = arith.constant 1 : i32
    %125 = vector.broadcast %c1_i32 : i32 to vector<8x128xi32>
    %126 = arith.cmpi eq, %119, %125 : vector<8x128xi32>
    %cst_54 = arith.constant 0.000000e+00 : f32
    %127 = vector.broadcast %27 : f32 to vector<8x128xf32>
    %128 = vector.broadcast %cst_54 : f32 to vector<8x128xf32>
    %129 = arith.select %126, %127, %128 : vector<8x128xi1>, vector<8x128xf32>
    %130 = arith.addf %124, %129 : vector<8x128xf32>
    %c2_i32 = arith.constant 2 : i32
    %131 = vector.broadcast %c2_i32 : i32 to vector<8x128xi32>
    %132 = arith.cmpi eq, %119, %131 : vector<8x128xi32>
    %cst_55 = arith.constant 0.000000e+00 : f32
    %133 = vector.broadcast %76 : f32 to vector<8x128xf32>
    %134 = vector.broadcast %cst_55 : f32 to vector<8x128xf32>
    %135 = arith.select %132, %133, %134 : vector<8x128xi1>, vector<8x128xf32>
    %136 = arith.addf %130, %135 : vector<8x128xf32>
    %c3_i32 = arith.constant 3 : i32
    %137 = vector.broadcast %c3_i32 : i32 to vector<8x128xi32>
    %138 = arith.cmpi eq, %119, %137 : vector<8x128xi32>
    %cst_56 = arith.constant 0.000000e+00 : f32
    %139 = vector.broadcast %118 : f32 to vector<8x128xf32>
    %140 = vector.broadcast %cst_56 : f32 to vector<8x128xf32>
    %141 = arith.select %138, %139, %140 : vector<8x128xi1>, vector<8x128xf32>
    %142 = arith.addf %136, %141 : vector<8x128xf32>
    %c0_57 = arith.constant 0 : index
    %c0_58 = arith.constant 0 : index
    %c0_59 = arith.constant 0 : index
    %143 = vector.load %arg8[%c0_57, %c0_58, %c0_59] : memref<1x8x128xf32, #tpu.memory_space<vmem>>, vector<1x8x128xf32>
    %144 = vector.shape_cast %143 : vector<1x8x128xf32> to vector<8x128xf32>
    %145 = vector.shape_cast %142 : vector<8x128xf32> to vector<1x8x128xf32>
    tpu.vector_store %arg8[%c0_57, %c0_58, %c0_59], %145 {strides = array<i32>} : memref<1x8x128xf32, #tpu.memory_space<vmem>>, vector<1x8x128xf32>,
    return
  }
  func.func @transform_0(%arg0: i32) -> (i32, i32, i32) {
    %c0_i32 = arith.constant 0 : i32
    %c0_i32_0 = arith.constant 0 : i32
    %c0_i32_1 = arith.constant 0 : i32
    return %arg0, %c0_i32, %c0_i32_0 : i32, i32, i32
  }
  func.func @transform_1(%arg0: i32) -> (i32, i32, i32) {
    %c0_i32 = arith.constant 0 : i32
    %c0_i32_0 = arith.constant 0 : i32
    %c0_i32_1 = arith.constant 0 : i32
    return %arg0, %c0_i32, %c0_i32_0 : i32, i32, i32
  }
  func.func @transform_2(%arg0: i32) -> (i32, i32, i32) {
    %c0_i32 = arith.constant 0 : i32
    %c0_i32_0 = arith.constant 0 : i32
    %c0_i32_1 = arith.constant 0 : i32
    return %arg0, %c0_i32, %c0_i32_0 : i32, i32, i32
  }
  func.func @transform_3(%arg0: i32) -> (i32, i32, i32) {
    %c0_i32 = arith.constant 0 : i32
    %c0_i32_0 = arith.constant 0 : i32
    %c0_i32_1 = arith.constant 0 : i32
    return %arg0, %c0_i32, %c0_i32_0 : i32, i32, i32
  }
  func.func @transform_4(%arg0: i32) -> (i32, i32, i32) {
    %c0_i32 = arith.constant 0 : i32
    %c0_i32_0 = arith.constant 0 : i32
    %c0_i32_1 = arith.constant 0 : i32
    return %arg0, %c0_i32, %c0_i32_0 : i32, i32, i32
  }
  func.func @transform_5(%arg0: i32) -> (i32, i32, i32) {
    %c0_i32 = arith.constant 0 : i32
    %c0_i32_0 = arith.constant 0 : i32
    %c0_i32_1 = arith.constant 0 : i32
    return %arg0, %c0_i32, %c0_i32_0 : i32, i32, i32
  }
  func.func @transform_6(%arg0: i32) -> (i32, i32, i32) {
    %c0_i32 = arith.constant 0 : i32
    %c0_i32_0 = arith.constant 0 : i32
    %c0_i32_1 = arith.constant 0 : i32
    return %arg0, %c0_i32, %c0_i32_0 : i32, i32, i32
  }
  func.func @transform_7(%arg0: i32) -> (i32, i32, i32) {
    %c0_i32 = arith.constant 0 : i32
    %c0_i32_0 = arith.constant 0 : i32
    %c0_i32_1 = arith.constant 0 : i32
    return %arg0, %c0_i32, %c0_i32_0 : i32, i32, i32
  }
}

</mosaic_0001>

<bundles_post_ra>
// kernel: tpu_custom_call.1
= control target key start
LH: loop header
LB: loop body
LE: loop exit
PB: predicated region body
PF: predicated region fallthrough
CT: control target
= control target key end

     0   :  { %s1542_s0 = inlined_call_operand.vmem [shape: f32[2,8,128], index: 0, kind: input, shape index: {}]   ;;  %s1543_s1 = inlined_call_operand.hbm [shape: f32[2,8,128], index: 1, kind: input, shape index: {}]   ;;  %s1544_s2 = inlined_call_operand.hbm [shape: f32[2,128,128], index: 2, kind: input, shape index: {}]   ;;  %s1545_s3 = inlined_call_operand.hbm [shape: f32[2,8,128], index: 3, kind: input, shape index: {}]   ;;  %s1546_s4 = inlined_call_operand.hbm [shape: f32[2,128,128], index: 4, kind: input, shape index: {}]   ;;  %s1547_s5 = inlined_call_operand.vmem [shape: s32[2,8,1], index: 5, kind: input, shape index: {}]   ;;  %s1548_s6 = inlined_call_operand.vmem [shape: s32[2,1,128], index: 6, kind: input, shape index: {}]   ;;  %s1549_s7 = inlined_call_operand.hbm [shape: f32[2,8,128], index: 7, kind: output, shape index: {}]  }
   0x1   :  { %1562 = sst [smem:[#allocation21_spill]] %s1544_s2 }
   0x2   :  { %1563 = sst [smem:[#allocation22_spill]] %s1549_s7 }
   0x3   :  { %12 = vsyncpa [#allocation3], 0 }
   0x4   :  { %14 = vsyncpa [#allocation3 + $0x1], 0 }
   0x5   :  { %15 = vsyncpa [#allocation6], 0 }
   0x6   :  { %17 = vsyncpa [#allocation6 + $0x1], 0 }
   0x7   :  { %18 = vsyncpa [#allocation9], 0 }
   0x8   :  { %20 = vsyncpa [#allocation9 + $0x1], 0 }
   0x9   :  { %21 = vsyncpa [#allocation4], 0 }
   0xa   :  { %23 = vsyncpa [#allocation4 + $0x1], 0  ;;  %s1239_s24 = smov 0   ;;  %s1241_s25 = smov 0  }
   0xb   :  { %s1243_s26 = smov 0   ;;  %s1245_s27 = smov 0  }
   0xc LB: > { %1564 = sst [smem:[#allocation15_spill]] %s1181_s24  ;;  %s1260_s28 = sadd.s32 4294967295, %s1193_s27   ;;  %s1193_s27 = sphi %s1245_s27, %s1586_s27   ;;  %s1189_s26 = sphi %s1243_s26, %s1588_s26   ;;  %s1185_s25 = sphi %s1241_s25, %s1590_s25   ;;  %s1181_s24 = sphi %s1239_s24, %s1589_s24  }
   0xd   : > { %1565 = sst [smem:[#allocation16_spill]] %s1189_s26  ;;  %s881_s29 = sadd.s32 4294967294, %s1193_s27  }
   0xe   : > { %s1264_s30 = sadd.s32 1, %s1193_s27   ;;  %s62_s8 = sadd.s32 1, %s1189_s26 }
   0xf   : > { %1566 = sst [smem:[#allocation17_spill]] %s1264_s30  ;;  %s59_s9 = ssub.s32 %s1193_s27, %s1264_s30 }
  0x10   : > { %p69_p0 = scmp.ne.s32.totalorder %s1189_s26, %s1185_s25  ;;  %p60_p1 = scmp.eq.s32.totalorder %s59_s9, 0 }
  0x11   : > { %p70_p2 = scmp.eq.s32.totalorder %s1193_s27, 0  ;;  %p75_p3 = scmp.ne.s32.totalorder %s1185_s25, %s1181_s24 }
  0x12   : > { %p76_p4 = scmp.eq.s32.totalorder %s1260_s28, 0  ;;  %p229_p7 = scmp.eq.s32.totalorder %s1260_s28, 1 }
  0x13   : > { %s1276_s10 = scalar_select %p60_p1, %s1189_s26, %s62_s8  }
  0x14   : > { %p71_p5 = por %p70_p2, %p69_p0  ;;  %p1278_p6 = por %p76_p4, %p75_p3 }
  0x15   : > { %1567 = sst [smem:[#allocation18_spill]] %s1276_s10  ;;  %p235_p8 = scmp.eq.s32.totalorder %s881_s29, 1 }
  0x16   : > { %p883_p9 = scmp.ge.s32.totalorder %s1193_s27, 2  ;;  %p944_p10 = scmp.lt.s32.totalorder %s1193_s27, 2 }
  0x17   : > { %p1285_p11 = por %p229_p7, %p69_p0  ;;  %p1289_p12 = por %p235_p8, %p75_p3 }
  0x18   : > { %s1294_s14 = sand.u32 1, %s1189_s26   ;;  %p1296_p13 = pnand %p944_p10, %p71_p5 }
  0x19   : > { %s1569_s12 = scalar_select %p1285_p11, 1, 0 }
  0x1a   : > { %s1571_s13 = scalar_select %p1289_p12, 1, 0 }
  0x1b   : > { %1570 = sst [smem:[#allocation19_spill]] %s1569_s12  ;;  %s281_s16 = sand.u32 1, %s1193_s27  }
  0x1c   : > { %1572 = sst [smem:[#allocation20_spill]] %s1571_s13  ;;  %s1550_s17 = sshll.u32 %s1294_s14, 7 }
  0x1d   : > { %s1551_s18 = sshll.u32 %s1193_s27, 7  ;;  %s1574_s2 = sld [smem:[#allocation21_spill]] }
  0x1e   : > { %s285_s22 = scalar_lea.vmem [#allocation5], %s1550_s17  ;;  %p894_p0 = scmp.ge.s32.totalorder %s1193_s27, 1 }
  0x1f   : > { %s293_s23 = sshll.u32 %s285_s22, 4  ;;  %s1311_s8 = scalar_lea.sflag [#allocation6], %s281_s16  ;;  %s294_s23 = int_to_ptr.vmem [resolvable:$true] %s293_s23 }
  0x20   : > { %p1003_p2 = pneg %p1296_p13 }
  0x23   : > { %s290_s21 = scalar_lea.hbm %s1574_s2, %s1551_s18  ;;  %s1006_s22 = scalar_lea.hbm %s1574_s2, 256 }
  0x24   : > { %s291_s29 = sshll.u32 %s290_s21, 4  ;;  %s292_s29 = int_to_ptr.hbm [resolvable:$true] %s291_s29 }
  0x25   : > { %s999_s9 = sshra.s32 %s292_s29, 4  ;;  %s1000_s9 = int_to_ptr.hbm [resolvable:$true] %s999_s9 }
  0x26   : > { %s1001_s10 = scalar_lea.hbm %s1000_s9, 128  ;;  %p1007_p5 = scmp.lt.s32.totalorder %s1000_s9, %s1574_s2 }
  0x27   : > { %p1002_p1 = scmp.ne.s32.totalorder %s1000_s9, %s1001_s10  ;;  %p1008_p7 = scmp.lt.s32.totalorder %s1006_s22, %s1001_s10 }
  0x29   : > { %p1004_p3 = pnand %p1003_p2, %p1002_p1  ;;  %p1009_p8 = por %p1008_p7, %p1007_p5 }
  0x2b   : > { %p1005_p4 = pneg %p1004_p3 }
  0x2d   : > { %p1010_p10 = pnand %p1009_p8, %p1005_p4 }
  0x2f   : > { %1013 = shalt.err (!%p1010_p10)
}
  0x30   : > { %s1555_s16 = smov 128   ;;  %s1556_s18 = smov 8  }
  0x31   : > { %933 = dma.hbm_to_vmem [thread:$0]  (!%p1296_p13), %s292_s29, 2048, %s294_s23, %s1311_s8, %s1555_s16, %s1555_s16, %s1556_s18  }
  0x32   : > { %p355_p1 = scmp.lt.s32.totalorder %s1193_s27, 3  ;;  %s884_s10 = sshll.u32 %s1294_s14, 3 }
  0x33   : > { %s885_s17 = sshll.u32 %s1193_s27, 3  ;;  %s266_s21 = scalar_lea.vmem [#allocation2], %s884_s10 }
  0x34   : > { %p1335_p3 = pnand %p894_p0, %p355_p1  ;;  %s270_s22 = scalar_lea.hbm %s1543_s1, %s885_s17 }
  0x35   : > { %s274_s2 = sshll.u32 %s266_s21, 4  ;;  %s272_s26 = sshll.u32 %s270_s22, 4  ;;  %s275_s2 = int_to_ptr.vmem [resolvable:$true] %s274_s2  ;;  %s273_s26 = int_to_ptr.hbm [resolvable:$true] %s272_s26 }
  0x36   : > { %s263_s30 = scalar_lea.sflag [#allocation3], %s1294_s14  ;;  %s1029_s23 = sshra.s32 %s273_s26, 4  ;;  %s1030_s23 = int_to_ptr.hbm [resolvable:$true] %s1029_s23 }
  0x37   : > { %s1031_s29 = scalar_lea.hbm %s1030_s23, 8  ;;  %s1036_s13 = scalar_lea.hbm %s1543_s1, 16 }
  0x38   : > { %p1032_p4 = scmp.ne.s32.totalorder %s1030_s23, %s1031_s29  ;;  %p1037_p7 = scmp.lt.s32.totalorder %s1030_s23, %s1543_s1 }
  0x39   : > { %p1038_p8 = scmp.lt.s32.totalorder %s1036_s13, %s1031_s29 }
  0x3a   : > { %p1034_p0 = pnand %p1032_p4, %p1003_p2 }
  0x3b   : > { %p1039_p10 = por %p1038_p8, %p1037_p7 }
  0x3c   : > { %p1035_p5 = pneg %p1034_p0 }
  0x3e   : > { %p1040_p1 = pnand %p1039_p10, %p1035_p5 }
  0x40   : > { %1043 = shalt.err (!%p1040_p1)
}
  0x41   : > { %930 = dma.hbm_to_vmem [thread:$0]  (!%p1296_p13), %s273_s26, 128, %s275_s2, %s263_s30  }
  0x42   : > { %s311_s24 = scalar_lea.hbm %s1545_s3, %s885_s17  ;;  %s307_s12 = scalar_lea.vmem [#allocation7], %s884_s10 }
  0x43   : > { %s315_s7 = sshll.u32 %s307_s12, 4  ;;  %s313_s18 = sshll.u32 %s311_s24, 4  ;;  %s316_s7 = int_to_ptr.vmem [resolvable:$true] %s315_s7  ;;  %s314_s18 = int_to_ptr.hbm [resolvable:$true] %s313_s18 }
  0x44   : > { %s1059_s16 = sshra.s32 %s314_s18, 4  ;;  %s1066_s2 = scalar_lea.hbm %s1545_s3, 16  ;;  %s1060_s16 = int_to_ptr.hbm [resolvable:$true] %s1059_s16 }
  0x45   : > { %s1061_s23 = scalar_lea.hbm %s1060_s16, 8  ;;  %p1067_p7 = scmp.lt.s32.totalorder %s1060_s16, %s1545_s3 }
  0x46   : > { %p1062_p4 = scmp.ne.s32.totalorder %s1060_s16, %s1061_s23  ;;  %p1068_p8 = scmp.lt.s32.totalorder %s1066_s2, %s1061_s23 }
  0x48   : > { %p1064_p0 = pnand %p1062_p4, %p1003_p2  ;;  %p1069_p10 = por %p1068_p8, %p1067_p7 }
  0x4a   : > { %p1065_p5 = pneg %p1064_p0 }
  0x4c   : > { %p1070_p1 = pnand %p1069_p10, %p1065_p5 }
  0x4e   : > { %1073 = shalt.err (!%p1070_p1)
}
  0x4f   : > { %936 = dma.hbm_to_vmem [thread:$0]  (!%p1296_p13), %s314_s18, 128, %s316_s7, %s1311_s8  }
  0x50   : > { %s1576_s24 = sshll.u32 %s1193_s27, 7  ;;  %s1577_s20 = sshll.u32 %s1294_s14, 7 }
  0x51   : > { %s331_s17 = scalar_lea.hbm %s1546_s4, %s1576_s24  ;;  %s326_s22 = scalar_lea.vmem [#allocation8], %s1577_s20 }
  0x52   : > { %s332_s19 = sshll.u32 %s331_s17, 4  ;;  %s334_s21 = sshll.u32 %s326_s22, 4  ;;  %s333_s19 = int_to_ptr.hbm [resolvable:$true] %s332_s19  ;;  %s335_s21 = int_to_ptr.vmem [resolvable:$true] %s334_s21 }
  0x53   : > { %s323_s16 = scalar_lea.sflag [#allocation9], %s1294_s14  ;;  %s1089_s23 = sshra.s32 %s333_s19, 4  ;;  %s1090_s23 = int_to_ptr.hbm [resolvable:$true] %s1089_s23 }
  0x54   : > { %s1091_s13 = scalar_lea.hbm %s1090_s23, 128  ;;  %s1096_s18 = scalar_lea.hbm %s1546_s4, 256 }
  0x55   : > { %p1092_p4 = scmp.ne.s32.totalorder %s1090_s23, %s1091_s13  ;;  %p1097_p7 = scmp.lt.s32.totalorder %s1090_s23, %s1546_s4 }
  0x56   : > { %p1098_p8 = scmp.lt.s32.totalorder %s1096_s18, %s1091_s13 }
  0x57   : > { %p1094_p0 = pnand %p1092_p4, %p1003_p2 }
  0x58   : > { %p1099_p10 = por %p1098_p8, %p1097_p7 }
  0x59   : > { %p1095_p5 = pneg %p1094_p0 }
  0x5b   : > { %p1100_p1 = pnand %p1099_p10, %p1095_p5 }
  0x5d   : > { %1103 = shalt.err (!%p1100_p1)
}
  0x5e   : > { %s1578_s14 = smov 8   ;;  %s1579_s26 = smov 128  }
  0x5f   : > { %939 = dma.hbm_to_vmem [thread:$0]  (!%p1296_p13), %s333_s19, 2048, %s335_s21, %s323_s16, %s1579_s26, %s1579_s26, %s1578_s14  }
  0x60   : > { %359 = sbr.rel (%p1335_p3) target bundleno = 1128 (0x468), region = 48  ;;  %s1394_s30 = sand.u32 (!%p1335_p3), 1, %s1185_s25  }
  0x61   : > { %s1397_s24 = sshll.u32 (!%p1335_p3), %s1394_s30, 3  ;;  %s362_s12 = scalar_lea.sflag (!%p1335_p3), [#allocation3], %s1394_s30 }
  0x62   : > { %s365_s10 = scalar_lea.vmem (!%p1335_p3), [#allocation2], %s1397_s24 }
  0x65   : > { %1164 = dma.done.wait (%p1278_p6), %s362_s12, 128  }
  0x66   : > { %1166 = vsyncadd (%p1278_p6), %s362_s12, 4294967168  ;;  %s371_s15 = sand.u32 1, %s1260_s28   ;;  %s896_s9 = sshll.u32 %s1394_s30, 7 }
  0x67   : > { %s372_s17 = scalar_lea.sflag [#allocation6], %s371_s15  ;;  %s1407_s19 = scalar_lea.vmem [#allocation5], %s896_s9 }
  0x68   : > { %1168 = dma.done.wait (%p1278_p6), %s372_s17, 2176  }
  0x69   : > { %1170 = vsyncadd (%p1278_p6), %s372_s17, 4294965120  ;;  %s385_s20 = scalar_lea.vmem [#allocation7], %s1397_s24  ;;  %s392_s22 = scalar_lea.sflag [#allocation9], %s1394_s30 }
  0x6a   : > { %s1415_s21 = scalar_lea.vmem [#allocation8], %s896_s9 }
  0x6b   : > { %1172 = dma.done.wait (%p1278_p6), %s392_s22, 2048  }
  0x6c   : > { %1174 = vsyncadd (%p1278_p6), %s392_s22, 4294965248  ;;  %v494_v0 = vld [vmem:[%s1407_s19 + $0x78] sm:$0xff]  ;;  %v530_v1 = vld [vmem:[%s1415_s21 + $0x78] sm:$0xff]  ;;  %p453_p6 = scmp.lt.s32.totalorder %s1260_s28, 1  ;;  %v1197_v24 = vmov 0   ;;  %v566_v38 = vlaneseq  ;;  %v1198_v45 = vmov 0.0  }
  0x6d   : > { %495 = vmatpush.xpose.msra.mxu0 %v494_v0  ;;  %531 = vmatpush.xpose.msra.mxu1 %v530_v1  ;;  %v493_v2 = vld [vmem:[%s1407_s19 + $0x70] sm:$0xff]  ;;  %v529_v3 = vld [vmem:[%s1415_s21 + $0x70] sm:$0xff]  ;;  %v492_v4 = vld [vmem:[%s1407_s19 + $0x68] sm:$0xff]  ;;  %vm615_vm12 = vcmask 7168   ;;  %s452_s8 = scalar_lea.vmem [#allocation10], %s1397_s24 }
  0x6e   : > { %v528_v5 = vld [vmem:[%s1415_s21 + $0x68] sm:$0xff]  ;;  %v491_v6 = vld [vmem:[%s1407_s19 + $0x60] sm:$0xff]  ;;  %v527_v7 = vld [vmem:[%s1415_s21 + $0x60] sm:$0xff]  ;;  %s1437_s11 = scalar_select %p453_p6, %s1260_s28, 1  ;;  %982 = vset.pattern.permute.xlu1 %v1197_v24  ;;  %983 = vset.pattern.permute.xlu0 %v1197_v24  ;;  %v1474_v41 = vand.u32 127, %v566_v38 }
  0x6f   : > { %v490_v8 = vld [vmem:[%s1407_s19 + $0x58] sm:$0xff]  ;;  %v526_v9 = vld [vmem:[%s1415_s21 + $0x58] sm:$0xff]  ;;  %v489_v10 = vld [vmem:[%s1407_s19 + $0x50] sm:$0xff]  ;;  %s709_s18 = sshll.u32 %s452_s8, 4  ;;  %s710_s18 = int_to_ptr.vmem [resolvable:$true] %s709_s18 }
  0x70   : > { %v525_v11 = vld [vmem:[%s1415_s21 + $0x50] sm:$0xff]  ;;  %v488_v12 = vld [vmem:[%s1407_s19 + $0x48] sm:$0xff]  ;;  %v524_v13 = vld [vmem:[%s1415_s21 + $0x48] sm:$0xff]  ;;  %s900_s16 = sshll.u32 %s1437_s11, 3  ;;  %s463_s26 = scalar_lea.vmem %s1548_s6, %s1437_s11  ;;  %vm568_vm1 = vcmp.lt.s32.totalorder %v1474_v41, 16  ;;  %vm680_vm13 = vcmp.eq.s32.totalorder %v1474_v41, 0 }
  0x71   : > { %496 = vmatpush.xpose.msra.mxu0 %v493_v2  ;;  %532 = vmatpush.xpose.msra.mxu1 %v529_v3  ;;  %v487_v14 = vld [vmem:[%s1407_s19 + $0x40] sm:$0xff]  ;;  %v523_v15 = vld [vmem:[%s1415_s21 + $0x40] sm:$0xff]  ;;  %s456_s7 = scalar_lea.vmem %s1542_s0, %s900_s16  ;;  %s460_s29 = scalar_lea.vmem %s1547_s5, %s900_s16  ;;  %v486_v16 = vld [vmem:[%s1407_s19 + $0x38] sm:$0xff]  ;;  %vm683_vm14 = vcmp.eq.s32.totalorder %v1474_v41, 1  ;;  %vm687_vm15 = vcmp.eq.s32.totalorder %v1474_v41, 2 }
  0x72   : > { %v522_v17 = vld [vmem:[%s1415_s21 + $0x38] sm:$0xff]  ;;  %v464_v18 = vld [vmem:[%s456_s7] sm:$0xff]  ;;  %v521_v23 = vld [vmem:[%s1415_s21 + $0x30] sm:$0xff]  ;;  %s1582_s11 = sld [smem:[#allocation22_spill]] }
  0x73   : > { %v465_v19 = vld [vmem:[%s385_s20] sm:$0xff]  ;;  %v569_v20 = vld [vmem:[%s460_s29] sm:$0xff]  ;;  %v520_v26 = vld [vmem:[%s1415_s21 + $0x28] sm:$0xff]  ;;  %s904_s20 = sshll.u32 %s1260_s28, 3  ;;  %s697_s28 = scalar_lea.sflag [#allocation4], %s1394_s30 }
  0x74   : > { %v1452_v21 = vsub.f32 %v464_v18, %v465_v19  ;;  %v485_v22 = vld [vmem:[%s1407_s19 + $0x30] sm:$0xff]  ;;  %572 = vperm.xlu1 %982, %v569_v20   ;;  %v484_v25 = vld [vmem:[%s1407_s19 + $0x28] sm:$0xff]  ;;  %v483_v27 = vld [vmem:[%s1407_s19 + $0x20] sm:$0xff] }
  0x75   : > { %497 = vmatpush.xpose.msra.mxu0 %v492_v4  ;;  %533 = vmatpush.xpose.msra.mxu1 %v528_v5  ;;  %v519_v28 = vld [vmem:[%s1415_s21 + $0x20] sm:$0xff]  ;;  %v482_v29 = vld [vmem:[%s1407_s19 + $0x18] sm:$0xff]  ;;  %v518_v30 = vld [vmem:[%s1415_s21 + $0x18] sm:$0xff] }
  0x76   : > { %v481_v31 = vld [vmem:[%s1407_s19 + $0x10] sm:$0xff]  ;;  %v517_v32 = vld [vmem:[%s1415_s21 + $0x10] sm:$0xff]  ;;  %v480_v33 = vld [vmem:[%s1407_s19 + $0x8] sm:$0xff] }
  0x77   : > { %v516_v34 = vld [vmem:[%s1415_s21 + $0x8] sm:$0xff]  ;;  %v479_v35 = vld [vmem:[%s1407_s19] sm:$0xff]  ;;  %v515_v36 = vld [vmem:[%s1415_s21] sm:$0xff] }
  0x78   : > { %v478_v37 = vld [vmem:[%s365_s10] sm:$0xff]  ;;  %s707_s16 = scalar_lea.hbm %s1582_s11, %s904_s20  ;;  %s1139_s24 = scalar_lea.hbm %s1582_s11, 16 }
  0x79   : > { %498 = vmatpush.xpose.msra.mxu0 %v491_v6  ;;  %534 = vmatpush.xpose.msra.mxu1 %v527_v7  ;;  %v984_v39 = vld [vmem:[%s463_s26] ss:$0 sm:$0xff]  ;;  %s711_s29 = sshll.u32 %s707_s16, 4  ;;  %s712_s29 = int_to_ptr.hbm [resolvable:$true] %s711_s29 }
  0x7a   : > { %s1133_s2 = sshra.s32 %s712_s29, 4  ;;  %s1134_s2 = int_to_ptr.hbm [resolvable:$true] %s1133_s2 }
  0x7b   : > { %s1135_s14 = scalar_lea.hbm %s1134_s2, 8  ;;  %p1140_p4 = scmp.lt.s32.totalorder %s1134_s2, %s1582_s11 }
  0x7c   : > { %p1136_p13 = scmp.ne.s32.totalorder %s1134_s2, %s1135_s14  ;;  %p1141_p0 = scmp.lt.s32.totalorder %s1139_s24, %s1135_s14 }
  0x7d   : > { %499 = vmatpush.xpose.msra.mxu0 %v490_v8  ;;  %535 = vmatpush.xpose.msra.mxu1 %v526_v9 }
  0x7e   : > { %p1137_p2 = pnand %p1136_p13, %p1285_p11  ;;  %p1142_p5 = por %p1141_p0, %p1140_p4 }
  0x80   : > { %p1138_p3 = pneg %p1137_p2 }
  0x81   : > { %500 = vmatpush.xpose.msra.mxu0 %v489_v10  ;;  %536 = vmatpush.xpose.msra.mxu1 %v525_v11 }
  0x82   : > { %p1143_p7 = pnand %p1142_p5, %p1138_p3 }
  0x85   : > { %501 = vmatpush.xpose.msra.mxu0 %v488_v12  ;;  %537 = vmatpush.xpose.msra.mxu1 %v524_v13 }
  0x89   : > { %502 = vmatpush.xpose.msra.mxu0 %v487_v14  ;;  %538 = vmatpush.xpose.msra.mxu1 %v523_v15 }
  0x8d   : > { %503 = vmatpush.xpose.msra.mxu0 %v486_v16  ;;  %539 = vmatpush.xpose.msra.mxu1 %v522_v17 }
  0x91   : > { %504 = vmatpush.xpose.msra.mxu0 %v485_v22  ;;  %540 = vmatpush.xpose.msra.mxu1 %v521_v23 }
  0x95   : > { %505 = vmatpush.xpose.msra.mxu0 %v484_v25  ;;  %541 = vmatpush.xpose.msra.mxu1 %v520_v26 }
  0x99   : > { %506 = vmatpush.xpose.msra.mxu0 %v483_v27  ;;  %542 = vmatpush.xpose.msra.mxu1 %v519_v28 }
  0x9d   : > { %507 = vmatpush.xpose.msra.mxu0 %v482_v29  ;;  %543 = vmatpush.xpose.msra.mxu1 %v518_v30 }
  0xa1   : > { %508 = vmatpush.xpose.msra.mxu0 %v481_v31  ;;  %544 = vmatpush.xpose.msra.mxu1 %v517_v32 }
  0xa5   : > { %509 = vmatpush.xpose.msra.mxu0 %v480_v33  ;;  %545 = vmatpush.xpose.msra.mxu1 %v516_v34 }
  0xa9   : > { %510 = vmatpush.xpose.msra.mxu0 %v479_v35  ;;  %546 = vmatpush.xpose.msra.mxu1 %v515_v36  ;;  %v467_v35 = vmul.f32 %v1452_v21, %v1452_v21 }
  0xac   : > { %511 = vmatmul.f32.vlgmr.msra.gmra.mxu0 %v478_v37  ;;  %547 = vmatmul.f32.vlgmr.msra.gmra.mxu1 %v465_v19 }
  0xe6   : > { %v573_v40 = vpop.permute.xlu1 %572 }
  0xe7   : > { %vm575_vm0 = vcmp.eq.s32.totalorder %v573_v40, %v984_v39 }
  0xe8   : > { %vm1479_vm2 = vmand %vm575_vm0, %vm568_vm1  ;;  %vm691_vm0 = vcmp.eq.s32.totalorder %v1474_v41, 3 }
  0xe9   : > { %v597_v46 = vsel %vm1479_vm2, 0.1, %v1198_v45  ;;  %v902_v11 = vsel %vm1479_vm2, 1.0, %v1198_v45 }
 0x129   : > { %v512_v43 = vpop.f32.mrf.mxu0  ;;  %v548_v44 = vpop.f32.mrf.mxu1 }
 0x12a   : > { %v596_v47 = vmul.f32 20.0, %v512_v43  ;;  %v1485_v48 = vsub.f32 %v512_v43, %v548_v44  ;;  %v627_v49 = vsel %vm568_vm1, %v548_v44, -1e+30 }
 0x12b   : > { %628 = vmax.xlane.f32.xlu0 %v627_v49 }
 0x12c   : > { %v598_v50 = vsub.f32 %v596_v47, %v597_v46 }
 0x12e   : > { %v1491_v51 = vsel %vm568_vm1, %v598_v50, -1e+30 }
 0x12f   : > { %600 = vmax.xlane.f32.xlu1 %v1491_v51 }
 0x19e   : > { %v629_v52 = vpop.xlane.xlu0 %628 }
 0x19f   : > { %v630_v53 = vsub.f32 %v627_v49, %v629_v52 }
 0x1a1   : > { %v631_v54 = vmul.f32 1.442695, %v630_v53 }
 0x1a2   : > { %v601_v55 = vpop.xlane.xlu1 %600 }
 0x1a3   : > { %985 = vpow2.f32 %v631_v54  ;;  %v602_v56 = vsub.f32 %v1491_v51, %v601_v55 }
 0x1a5   : > { %v603_v57 = vmul.f32 1.442695, %v602_v56 }
 0x1a7   : > { %987 = vpow2.f32 %v603_v57 }
 0x1a9   : > { %v986_v58 = vpop.eup %985 }
 0x1aa   : > { %633 = vadd.xlane.f32.xlu0 %v986_v58 }
 0x1ad   : > { %v988_v59 = vpop.eup %987 }
 0x1b2   : > { %605 = vadd.xlane.f32.xlu0 %v988_v59 }
 0x21d   : > { %v634_v60 = vpop.xlane.xlu0 %633 }
 0x21e   : > { %989 = vrcp.f32 %v634_v60  ;;  %v646_v0 = vand.u32 2147483648, %v634_v60  ;;  %v644_v2 = vand.u32 2147483647, %v634_v60  ;;  %vm640_vm4 = vweird.f32 %v634_v60 }
 0x220   : > { %v647_v4 = vor.u32 1.1754944e-38, %v646_v0  ;;  %vm645_vm6 = vcmp.eq.f32.partialorder %v644_v2, 8.507059e+37 }
 0x224   : > { %v990_v61 = vpop.eup %989 }
 0x225   : > { %v636_v62 = vmul.f32 %v990_v61, %v634_v60  ;;  %vm641_vm3 = vweird.f32 %v990_v61  ;;  %v606_v15 = vpop.xlane.xlu0 %605 }
 0x226   : > { %vm642_vm5 = vmor %vm640_vm4, %vm641_vm3 }
 0x227   : > { %v637_v63 = vsub.f32 1.0, %v636_v62 }
 0x229   : > { %v638_v1 = vmul.f32 %v990_v61, %v637_v63 }
 0x22b   : > { %v639_v3 = vadd.f32 %v990_v61, %v638_v1 }
 0x22d   : > { %v643_v5 = vsel %vm642_vm5, %v990_v61, %v639_v3 }
 0x22e   : > { %v648_v6 = vsel %vm645_vm6, %v647_v4, %v643_v5 }
 0x22f   : > { %v649_v7 = vmul.f32 %v986_v58, %v648_v6 }
 0x231   : > { %vm650_vm7 = vcmp.gt.f32.partialorder %v649_v7, 0.0 }
 0x232   : > { %v651_v8 = vsel %vm650_vm7, 0.1, %v1198_v45  ;;  %v552_v45 = vmul.f32 %v1485_v48, %v1485_v48 }
 0x233   : > { %v652_v9 = vsub.f32 %v596_v47, %v651_v8 }
 0x235   : > { %v653_v10 = vsel %vm568_vm1, %v652_v9, -1e+30 }
 0x236   : > { %654 = vmax.xlane.f32.xlu2 %v653_v10 }
 0x23e   : > { %579 = vadd.xlane.f32.xlu2 %v902_v11 }
 0x2a9   : > { %v655_v12 = vpop.xlane.xlu2 %654 }
 0x2aa   : > { %v656_v13 = vsub.f32 %v653_v10, %v655_v12 }
 0x2ac   : > { %v657_v14 = vmul.f32 1.442695, %v656_v13 }
 0x2ae   : > { %991 = vpow2.f32 %v657_v14 }
 0x2af   : > { %993 = vlog2.f32 %v606_v15 }
 0x2b1   : > { %v580_v16 = vpop.xlane.xlu2 %579 }
 0x2b2   : > { %995 = vrcp.f32 %v580_v16  ;;  %v592_v24 = vand.u32 2147483648, %v580_v16  ;;  %v590_v26 = vand.u32 2147483647, %v580_v16  ;;  %vm586_vm9 = vweird.f32 %v580_v16 }
 0x2b4   : > { %v992_v17 = vpop.eup %991  ;;  %v593_v29 = vor.u32 1.1754944e-38, %v592_v24  ;;  %vm591_vm11 = vcmp.eq.f32.partialorder %v590_v26, 8.507059e+37 }
 0x2b5   : > { %659 = vadd.xlane.f32.xlu2 %v992_v17  ;;  %v994_v18 = vpop.eup %993 }
 0x2b6   : > { %v608_v22 = vmul.f32 0.6931472, %v994_v18 }
 0x2b8   : > { %v996_v19 = vpop.eup %995  ;;  %v609_v27 = vadd.f32 %v608_v22, %v601_v55 }
 0x2b9   : > { %v582_v20 = vmul.f32 %v996_v19, %v580_v16  ;;  %vm587_vm8 = vweird.f32 %v996_v19 }
 0x2ba   : > { %vm588_vm10 = vmor %vm586_vm9, %vm587_vm8  ;;  %v610_v33 = vsub.f32 %v609_v27, %v1491_v51 }
 0x2bb   : > { %v583_v23 = vsub.f32 1.0, %v582_v20 }
 0x2bd   : > { %v584_v25 = vmul.f32 %v996_v19, %v583_v23 }
 0x2bf   : > { %v585_v28 = vadd.f32 %v996_v19, %v584_v25 }
 0x2c1   : > { %v589_v30 = vsel %vm588_vm10, %v996_v19, %v585_v28 }
 0x2c2   : > { %v594_v31 = vsel %vm591_vm11, %v593_v29, %v589_v30 }
 0x2c3   : > { %v595_v32 = vmul.f32 %v902_v11, %v594_v31 }
 0x2c5   : > { %v611_v34 = vmul.f32 %v610_v33, %v595_v32 }
 0x2c7   : > { %612 = vadd.xlane.f32.xlu0 %v611_v34 }
 0x2cf   : > { %468 = vadd.xlane.f32.xlu0 %v467_v35 }
 0x328   : > { %v660_v36 = vpop.xlane.xlu2 %659 }
 0x329   : > { %997 = vlog2.f32 %v660_v36 }
 0x32f   : > { %v998_v37 = vpop.eup %997 }
 0x330   : > { %v662_v38 = vmul.f32 0.6931472, %v998_v37 }
 0x332   : > { %v663_v39 = vadd.f32 %v662_v38, %v655_v12 }
 0x334   : > { %v664_v40 = vsub.f32 %v663_v39, %v653_v10 }
 0x336   : > { %v665_v42 = vmul.f32 %v664_v40, %v649_v7 }
 0x338   : > { %666 = vadd.xlane.f32.xlu2 %v665_v42 }
 0x33a   : > { %v613_v43 = vpop.xlane.xlu0 %612 }
 0x33b   : > { %v616_v44 = vsel %vm615_vm12, %v613_v43, 0.0 }
 0x33c   : > { %617 = vadd.xlane.f32.xlu0 %v616_v44 }
 0x340   : > { %553 = vadd.xlane.f32.xlu2 %v552_v45 }
 0x342   : > { %v469_v46 = vpop.xlane.xlu0 %468 }
 0x343   : > { %v470_v47 = vrot.slane %v469_v46, 4 }
 0x345   : > { %v471_v21 = vadd.f32 %v470_v47, %v469_v46 }
 0x347   : > { %v472_v49 = vrot.slane %v471_v21, 2 }
 0x349   : > { %v473_v50 = vadd.f32 %v472_v49, %v471_v21 }
 0x34b   : > { %v474_v51 = vrot.slane %v473_v50, 1 }
 0x34d   : > { %v475_v52 = vadd.f32 %v474_v51, %v473_v50 }
 0x34f   : > { %909 = vpush %v475_v52 }
 0x380   : > { %s910_s12 = spop %909 }
 0x381   : > { %s477_s15 = smul.f32 0.00390625, %s910_s12 }
 0x383   : > { %v681_v11 = vstv %s477_s15 }
 0x384   : > { %v682_v13 = vsel %vm680_vm13, %v681_v11, 0.0 }
 0x3ab   : > { %v667_v53 = vpop.xlane.xlu2 %666 }
 0x3ac   : > { %v669_v54 = vsel %vm615_vm12, %v667_v53, 0.0 }
 0x3ad   : > { %670 = vadd.xlane.f32.xlu2 %v669_v54 }
 0x3af   : > { %v618_v55 = vpop.xlane.xlu0 %617 }
 0x3b0   : > { %v619_v56 = vrot.slane %v618_v55, 4 }
 0x3b2   : > { %v620_v57 = vadd.f32 %v619_v56, %v618_v55 }
 0x3b3   : > { %v554_v58 = vpop.xlane.xlu2 %553 }
 0x3b4   : > { %v621_v59 = vrot.slane %v620_v57, 2  ;;  %v555_v60 = vrot.slane %v554_v58, 4 }
 0x3b6   : > { %v556_v61 = vadd.f32 %v555_v60, %v554_v58  ;;  %v622_v48 = vadd.f32 %v621_v59, %v620_v57 }
 0x3b8   : > { %v557_v62 = vrot.slane %v556_v61, 2  ;;  %v623_v0 = vrot.slane %v622_v48, 1 }
 0x3ba   : > { %v558_v63 = vadd.f32 %v557_v62, %v556_v61  ;;  %v624_v3 = vadd.f32 %v623_v0, %v622_v48 }
 0x3bc   : > { %v559_v1 = vrot.slane %v558_v63, 1 }
 0x3be   : > { %v560_v2 = vadd.f32 %v559_v1, %v558_v63 }
 0x3c0   : > { %911 = vpush %v560_v2 }
 0x3c1   : > { %913 = vpush %v624_v3 }
 0x3f1   : > { %s912_s10 = spop %911 }
 0x3f2   : > { %s562_s9 = smul.f32 0.0078125, %s912_s10  ;;  %s914_s17 = spop %913 }
 0x3f3   : > { %s626_s19 = smul.f32 0.125, %s914_s17 }
 0x3f4   : > { %v684_v12 = vstv %s562_s9 }
 0x3f5   : > { %v685_v14 = vsel %vm683_vm14, %v684_v12, 0.0  ;;  %v688_v16 = vstv %s626_s19 }
 0x3f6   : > { %v686_v15 = vadd.f32 %v685_v14, %v682_v13  ;;  %v689_v17 = vsel %vm687_vm15, %v688_v16, 0.0 }
 0x3f8   : > { %v690_v18 = vadd.f32 %v689_v17, %v686_v15 }
 0x420   : > { %v671_v4 = vpop.xlane.xlu2 %670 }
 0x421   : > { %v672_v5 = vrot.slane %v671_v4, 4 }
 0x423   : > { %v673_v6 = vadd.f32 %v672_v5, %v671_v4 }
 0x425   : > { %v674_v7 = vrot.slane %v673_v6, 2 }
 0x427   : > { %v675_v8 = vadd.f32 %v674_v7, %v673_v6 }
 0x429   : > { %v676_v9 = vrot.slane %v675_v8, 1 }
 0x42b   : > { %v677_v10 = vadd.f32 %v676_v9, %v675_v8 }
 0x42d   : > { %915 = vpush %v677_v10 }
 0x45e   : > { %s916_s23 = spop %915 }
 0x45f   : > { %s679_s13 = smul.f32 0.125, %s916_s23 }
 0x461   : > { %v692_v19 = vstv %s679_s13 }
 0x462   : > { %v693_v20 = vsel %vm691_vm0, %v692_v19, 0.0 }
 0x463   : > { %v694_v22 = vadd.f32 %v693_v20, %v690_v18 }
 0x465   : > { %695 = vst [vmem:[%s452_s8] sm:$0xff] %v694_v22 }
 0x466   : > { %1146 = shalt.err (!%p1143_p7)
}
 0x467   : > { %925 = dma.vmem_to_hbm [thread:$0]  (%p1285_p11), %s710_s18, 128, %s712_s29, %s697_s28  }
 0x468 PF: > { %s1584_s30 = sld [smem:[#allocation15_spill]]  ;;  %p941_p8 = pnand %p883_p9, %p1289_p12 }
 0x46a   : > { %p942_p10 = pneg %p941_p8 }
 0x46e   : > { %s723_s17 = sand.u32 1, %s1584_s30  }
 0x46f   : > { %s724_s19 = scalar_lea.sflag [#allocation4], %s723_s17 }
 0x470   : > { %1176 = dma.done.wait (%p942_p10), %s724_s19, 128  }
 0x471   : > { %1178 = vsyncadd (%p942_p10), %s724_s19, 4294967168  ;;  %s1586_s27 = sld [smem:[#allocation17_spill]]  ;;  %s1589_s24 = smov %s1185_s25 }
 0x472   : > { %s1587_s20 = sld [smem:[#allocation16_spill]] }
 0x473   : > { %s1588_s26 = sld [smem:[#allocation18_spill]] }
 0x477   : > { %p26_p1 = scmp.ge.s32.totalorder %s1586_s27, 4  }
 0x478   : > { %s1590_s25 = smov %s1587_s20 }
 0x479   :  { %28 = sbr.rel (!%p26_p1) target bundleno = 12 (0xc), region = 139 }
 0x47e   :  { %730 = vsyncpa [#allocation3], 1 }
 0x47f   :  { %732 = vsyncpa [#allocation3 + $0x1], 1 }
 0x480   :  { %733 = vsyncpa [#allocation6], 1 }
 0x481   :  { %735 = vsyncpa [#allocation6 + $0x1], 1 }
 0x482   :  { %736 = vsyncpa [#allocation9], 1 }
 0x483   :  { %738 = vsyncpa [#allocation9 + $0x1], 1 }
 0x484   :  { %739 = vsyncpa [#allocation4], 1 }
 0x485   :  { %741 = vsyncpa [#allocation4 + $0x1], 1 }

</bundles_post_ra>
